<compile_context>
chip_gen: v7x
topology: tpu7x:2x2x1
jax: 0.10.0
libtpu: 0.0.40
codegen_flags: <defaults>
</compile_context>

<pallas_src>
import functools

import jax
import jax.numpy as jnp
from jax import lax
from jax.experimental import pallas as pl
from jax.experimental.pallas import tpu as pltpu


def _round_up(x, m):
    return ((x + m - 1) // m) * m


def _vmem_capacity_bytes():
    # Generation detection; fall back to the smallest (v7x-sized) VMEM so the
    # conservative tiling is used if the query is unavailable.
    try:
        return int(pltpu.get_tpu_info().vmem_capacity_bytes)
    except Exception:
        return 64 * 1024 * 1024


def _label_smooth_kernel(x_ref, t_ref, o_ref, *,
                         smoothing, n_valid, tile_n, ragged):
    i = pl.program_id(0)

    x_raw = x_ref[...]                                 # (tile_n, C) input dtype
    C = x_raw.shape[-1]
    x = x_raw.astype(jnp.float32)                      # f32 in-register
    tgt = t_ref[...]                                   # (tile_n, 1) int32

    # Numerically stable log-softmax statistics (lane reductions on XLU,
    # exp on EUP), all in f32.
    m = jnp.max(x, axis=-1, keepdims=True)             # (tile_n, 1)
    shifted = x - m
    lse = jnp.log(jnp.sum(jnp.exp(shifted), axis=-1, keepdims=True))
    sum_shifted = jnp.sum(shifted, axis=-1, keepdims=True)

    # Raw logit at the target class.  Lane-only (1, C) iota broadcast over
    # sublanes; the select/sum runs on the raw dtype (packed bf16 -> 2x VALU
    # rate) and is exact: every non-target entry is exactly 0.
    col = lax.broadcasted_iota(jnp.int32, (1, C), 1)   # (1, C)
    x_t = jnp.sum(jnp.where(col == tgt, x_raw, jnp.zeros((), x_raw.dtype)),
                  axis=-1, keepdims=True).astype(jnp.float32)   # (tile_n, 1)

    off_val = (float(smoothing) / (C - 1.0)) if C > 1 else 0.0
    tgt_extra = (1.0 - float(smoothing)) - off_val

    # sum_c log_prob_c = sum_shifted - C*lse ;  log_prob[target] = x_t - m - lse
    per_row = -(off_val * (sum_shifted - C * lse)
                + tgt_extra * ((x_t - m) - lse))       # (tile_n, 1) f32

    if ragged:
        # Last tile over-reads past N: zero those rows with a SELECT (not a
        # multiply) so NaN/Inf garbage cannot propagate.  Cheap: (tile_n, 1).
        row = i * tile_n + lax.broadcasted_iota(jnp.int32, (tile_n, 1), 0)
        per_row = jnp.where(row < n_valid, per_row, 0.0)

    o_ref[...] = per_row


def label_smooth_loss_v2(logits, target, smoothing=0.0, tile_n=None):
    """logits: (..., C) float (f32 or bf16), target: (...,) int.

    Returns the scalar label-smoothed loss (float32), matching
    LabelSmoothLossV2.forward.
    """
    C = logits.shape[-1]
    x = logits.reshape(-1, C)              # keep original dtype (bf16 stays bf16)
    N = x.shape[0]
    t2 = target.reshape(-1, 1).astype(jnp.int32)

    itemsize = jnp.dtype(x.dtype).itemsize
    # Sublane packing: 8 rows for 32-bit, 16 for 16-bit, 32 for 8-bit dtypes.
    pack = max(8, 32 // max(1, itemsize))

    # Generation-aware block budget (input-block BYTES) and VMEM limit.
    vmem_cap = _vmem_capacity_bytes()
    if vmem_cap <= 80 * 1024 * 1024:                   # v7x: 64 MiB per TC
        budget = 4 * 1024 * 1024
        vmem_limit = 48 * 1024 * 1024
    else:                                              # v5e / v6e: 128 MiB
        budget = 8 * 1024 * 1024
        vmem_limit = 96 * 1024 * 1024

    if tile_n is None:
        # Size from the ACTUAL itemsize so bf16 blocks carry the same bytes
        # as f32 blocks (half the grid steps vs. element-count sizing).
        t = max(pack, int(budget // (C * itemsize)))
        t = min(t, 65536)                              # sanity bound for tiny C
        t = max(pack, (t // pack) * pack)
        t = min(t, _round_up(N, pack))                 # never bigger than the data
        tile_n = max(pack, (t // pack) * pack)
    else:
        assert tile_n % pack == 0, "tile_n must be a multiple of the sublane pack"

    num_tiles = (N + tile_n - 1) // tile_n
    ragged = (N % tile_n) != 0

    # Per-row losses are written block-by-block (no carried state), so the
    # grid axis is "parallel" -> both v7x TensorCores are used; the tiny
    # (N, 1) partial sum outside costs ~N*4 bytes of extra HBM traffic.
    per_row = pl.pallas_call(
        functools.partial(_label_smooth_kernel,
                          smoothing=float(smoothing),
                          n_valid=N,
                          tile_n=tile_n,
                          ragged=ragged),
        out_shape=jax.ShapeDtypeStruct((N, 1), jnp.float32),
        grid=(num_tiles,),
        in_specs=[
            pl.BlockSpec((tile_n, C), lambda i: (i, 0)),   # logits rows
            pl.BlockSpec((tile_n, 1), lambda i: (i, 0)),   # targets
        ],
        out_specs=pl.BlockSpec((tile_n, 1), lambda i: (i, 0)),
        compiler_params=pltpu.CompilerParams(
            dimension_semantics=("parallel",),
            vmem_limit_bytes=vmem_limit),
    )(x, t2)

    return jnp.sum(per_row) / jnp.float32(N)


def _reference(logits, target, smoothing):
    # Pure-JAX reference replicating the PyTorch forward exactly.
    C = logits.shape[-1]
    log_prob = jax.nn.log_softmax(logits, axis=-1)
    weight = jnp.full_like(logits, smoothing / (C - 1.0))
    onehot = jax.nn.one_hot(target, C, dtype=logits.dtype)
    weight = weight * (1.0 - onehot) + onehot * (1.0 - smoothing)
    return jnp.mean(jnp.sum(-weight * log_prob, axis=-1))


if __name__ == "__main__":
    key = jax.random.PRNGKey(0)
    k1, k2, k3, k4 = jax.random.split(key, 4)
    smoothing = 0.1

    # Case 1: small 2-D logits (batch=16, classes=32), f32, single tile.
    N, C = 16, 32
    logits = jax.random.normal(k1, (N, C), dtype=jnp.float32)
    target = jax.random.randint(k2, (N,), 0, C, dtype=jnp.int32)
    loss = jax.block_until_ready(label_smooth_loss_v2(logits, target, smoothing))
    ref = _reference(logits, target, smoothing)
    assert jnp.allclose(loss, ref, atol=1e-5, rtol=1e-5), (loss, ref)

    # Case 2: leading dims, N=21 not a tile multiple, forced small tile ->
    # multi-step grid with a ragged (unpadded) last tile + in-kernel mask.
    B, S, C2 = 3, 7, 40
    logits2 = jax.random.normal(k3, (B, S, C2), dtype=jnp.float32)
    target2 = jax.random.randint(k4, (B, S), 0, C2, dtype=jnp.int32)
    loss2 = jax.block_until_ready(
        label_smooth_loss_v2(logits2, target2, smoothing, tile_n=8))
    ref2 = _reference(logits2, target2, smoothing)
    assert jnp.allclose(loss2, ref2, atol=1e-5, rtol=1e-5), (loss2, ref2)

    # Case 3: bf16 logits fed through the DMA unconverted (half HBM traffic),
    # target select runs on packed bf16, logsumexp stays f32.
    logits3 = logits.astype(jnp.bfloat16)
    loss3 = jax.block_until_ready(label_smooth_loss_v2(logits3, target, smoothing))
    ref3 = _reference(logits3.astype(jnp.float32), target, smoothing)
    assert jnp.allclose(loss3, ref3, atol=1e-4, rtol=1e-4), (loss3, ref3)

    print("KERNEL_OK")
</pallas_src>

<mosaic_0001>
module attributes {stable_mosaic.version = 11 : i64} {
  func.func @_label_smooth_kernel(%arg0: i32, %arg1: memref<16x32xf32, #tpu.memory_space<vmem>>, %arg2: memref<16x1xi32, #tpu.memory_space<vmem>>, %arg3: memref<16x1xf32, #tpu.memory_space<vmem>>) attributes {dimension_semantics = [#tpu.dimension_semantics<parallel>], iteration_bounds = array<i64: 1>, scalar_prefetch = 0 : i64, scratch_operands = 0 : i64, tpu.core_type = #tpu.core_type<tc>, window_params = [{transform_indices = @transform_0, window_bounds = array<i64: 16, 32>}, {transform_indices = @transform_1, window_bounds = array<i64: 16, 1>}, {transform_indices = @transform_2, window_bounds = array<i64: 16, 1>}]} {
    %c0 = arith.constant 0 : index
    %c0_0 = arith.constant 0 : index
    %0 = vector.load %arg1[%c0, %c0_0] : memref<16x32xf32, #tpu.memory_space<vmem>>, vector<16x32xf32>
    %c0_1 = arith.constant 0 : index
    %c0_2 = arith.constant 0 : index
    %1 = vector.load %arg2[%c0_1, %c0_2] : memref<16x1xi32, #tpu.memory_space<vmem>>, vector<16x1xi32>
    %cst = arith.constant dense<0xFF800000> : vector<16xf32>
    %2 = vector.multi_reduction <maximumf>, %0, %cst [1] : vector<16x32xf32> to vector<16xf32>
    %3 = vector.shape_cast %2 : vector<16xf32> to vector<16x1xf32>
    %4 = vector.broadcast %3 : vector<16x1xf32> to vector<16x32xf32>
    %5 = arith.subf %0, %4 : vector<16x32xf32>
    %6 = math.exp %5 : vector<16x32xf32>
    %cst_3 = arith.constant dense<0.000000e+00> : vector<16xf32>
    %7 = vector.multi_reduction <add>, %6, %cst_3 [1] : vector<16x32xf32> to vector<16xf32>
    %8 = vector.shape_cast %7 : vector<16xf32> to vector<16x1xf32>
    %9 = math.log %8 : vector<16x1xf32>
    %cst_4 = arith.constant dense<0.000000e+00> : vector<16xf32>
    %10 = vector.multi_reduction <add>, %5, %cst_4 [1] : vector<16x32xf32> to vector<16xf32>
    %11 = vector.shape_cast %10 : vector<16xf32> to vector<16x1xf32>
    %12 = tpu.iota {dimensions = array<i32: 1>} : vector<1x32xi32>
    %13 = vector.broadcast %12 : vector<1x32xi32> to vector<16x32xi32>
    %14 = vector.broadcast %1 : vector<16x1xi32> to vector<16x32xi32>
    %15 = arith.cmpi eq, %13, %14 : vector<16x32xi32>
    %cst_5 = arith.constant 0.000000e+00 : f32
    %16 = vector.broadcast %cst_5 : f32 to vector<16x32xf32>
    %17 = arith.select %15, %0, %16 : vector<16x32xi1>, vector<16x32xf32>
    %cst_6 = arith.constant dense<0.000000e+00> : vector<16xf32>
    %18 = vector.multi_reduction <add>, %17, %cst_6 [1] : vector<16x32xf32> to vector<16xf32>
    %19 = vector.shape_cast %18 : vector<16xf32> to vector<16x1xf32>
    %cst_7 = arith.constant 3.200000e+01 : f32
    %20 = vector.broadcast %cst_7 : f32 to vector<16x1xf32>
    %21 = arith.mulf %20, %9 : vector<16x1xf32>
    %22 = arith.subf %11, %21 : vector<16x1xf32>
    %cst_8 = arith.constant 0.0032258064 : f32
    %23 = vector.broadcast %cst_8 : f32 to vector<16x1xf32>
    %24 = arith.mulf %23, %22 : vector<16x1xf32>
    %25 = arith.subf %19, %3 : vector<16x1xf32>
    %26 = arith.subf %25, %9 : vector<16x1xf32>
    %cst_9 = arith.constant 0.896774172 : f32
    %27 = vector.broadcast %cst_9 : f32 to vector<16x1xf32>
    %28 = arith.mulf %27, %26 : vector<16x1xf32>
    %29 = arith.addf %24, %28 : vector<16x1xf32>
    %cst_10 = arith.constant 0.000000e+00 : f32
    %30 = vector.broadcast %cst_10 : f32 to vector<16x1xf32>
    %31 = arith.subf %30, %29 : vector<16x1xf32>
    %c0_11 = arith.constant 0 : index
    %c0_12 = arith.constant 0 : index
    %32 = vector.load %arg3[%c0_11, %c0_12] : memref<16x1xf32, #tpu.memory_space<vmem>>, vector<16x1xf32>
    tpu.vector_store %arg3[%c0_11, %c0_12], %31 {strides = array<i32>} : memref<16x1xf32, #tpu.memory_space<vmem>>, vector<16x1xf32>,
    return
  }
  func.func @transform_0(%arg0: i32) -> (i32, i32) {
    %c0_i32 = arith.constant 0 : i32
    %c0_i32_0 = arith.constant 0 : i32
    return %arg0, %c0_i32 : i32, i32
  }
  func.func @transform_1(%arg0: i32) -> (i32, i32) {
    %c0_i32 = arith.constant 0 : i32
    %c0_i32_0 = arith.constant 0 : i32
    return %arg0, %c0_i32 : i32, i32
  }
  func.func @transform_2(%arg0: i32) -> (i32, i32) {
    %c0_i32 = arith.constant 0 : i32
    %c0_i32_0 = arith.constant 0 : i32
    return %arg0, %c0_i32 : i32, i32
  }
}

</mosaic_0001>

<bundles_post_ra>
// kernel: tpu_custom_call.1
= control target key start
LH: loop header
LB: loop body
LE: loop exit
PB: predicated region body
PF: predicated region fallthrough
CT: control target
= control target key end

     0   :  { %vm15_vm0 = vcmask 261120   ;;  %v96_v2 = vmov 0   ;;  %v44_v11 = vlaneseq  ;;  %vm78_vm3 = vcmask 7168   ;;  %s138_s0 = inlined_call_operand.vmem [shape: f32[16,32], index: 0, kind: input, shape index: {}]   ;;  %s139_s1 = inlined_call_operand.vmem [shape: s32[16,1], index: 1, kind: input, shape index: {}]   ;;  %s140_s2 = inlined_call_operand.vmem [shape: f32[16,1], index: 2, kind: output, shape index: {}]  }
   0x1   :  { %v11_v0 = vld [vmem:[%s138_s0] sm:$0xff]  ;;  %v12_v1 = vld [vmem:[%s138_s0 + $0x8] sm:$0xff]  ;;  %86 = vset.pattern.permute.xlu1 %v96_v2  ;;  %87 = vset.pattern.permute.xlu0 %v96_v2 }
   0x2   :  { %v13_v3 = vld [vmem:[%s139_s1] sm:$0xff]  ;;  %v16_v4 = vsel %vm15_vm0, %v11_v0, -inf  ;;  %v14_v5 = vld [vmem:[%s139_s1 + $0x8] sm:$0xff]  ;;  %v19_v6 = vsel %vm15_vm0, %v12_v1, -inf  ;;  %v45_v15 = vand.u32 127, %v44_v11 }
   0x3   :  { %47 = vperm.xlu1 %86, %v13_v3   ;;  %17 = vmax.xlane.f32.xlu0 %v16_v4 }
   0x7   :  { %50 = vperm.xlu1 %86, %v14_v5   ;;  %20 = vmax.xlane.f32.xlu0 %v19_v6 }
  0x82   :  { %v48_v14 = vpop.permute.xlu1 %47 }
  0x83   :  { %vm52_vm1 = vcmp.eq.s32.totalorder %v45_v15, %v48_v14 }
  0x84   :  { %v54_v18 = vsel %vm52_vm1, %v11_v0, 0.0 }
  0x85   :  { %v56_v20 = vsel %vm15_vm0, %v54_v18, 0.0 }
  0x86   :  { %v51_v16 = vpop.permute.xlu1 %50 }
  0x87   :  { %vm53_vm2 = vcmp.eq.s32.totalorder %v45_v15, %v51_v16 }
  0x88   :  { %v55_v22 = vsel %vm53_vm2, %v12_v1, 0.0 }
  0x89   :  { %v59_v24 = vsel %vm15_vm0, %v55_v22, 0.0 }
  0x90   :  { %v18_v7 = vpop.xlane.xlu0 %17 }
  0x91   :  { %v22_v8 = vsub.f32 %v11_v0, %v18_v7 }
  0x93   :  { %v24_v9 = vmul.f32 1.442695, %v22_v8  ;;  %v38_v25 = vsel %vm15_vm0, %v22_v8, 0.0 }
  0x94   :  { %v21_v10 = vpop.xlane.xlu0 %20 }
  0x95   :  { %88 = vpow2.f32 %v24_v9  ;;  %v23_v12 = vsub.f32 %v12_v1, %v21_v10 }
  0x97   :  { %v26_v13 = vmul.f32 1.442695, %v23_v12  ;;  %v41_v26 = vsel %vm15_vm0, %v23_v12, 0.0 }
  0x99   :  { %90 = vpow2.f32 %v26_v13 }
  0x9f   :  { %v89_v17 = vpop.eup %88 }
  0xa0   :  { %v28_v19 = vsel %vm15_vm0, %v89_v17, 0.0 }
  0xa1   :  { %29 = vadd.xlane.f32.xlu0 %v28_v19 }
  0xa3   :  { %v91_v21 = vpop.eup %90 }
  0xa4   :  { %v31_v23 = vsel %vm15_vm0, %v91_v21, 0.0 }
  0xa5   :  { %57 = vadd.xlane.f32.xlu0 %v56_v20  ;;  %32 = vadd.xlane.f32.xlu1 %v31_v23 }
  0xa9   :  { %60 = vadd.xlane.f32.xlu0 %v59_v24 }
  0xad   :  { %39 = vadd.xlane.f32.xlu0 %v38_v25 }
  0xb1   :  { %42 = vadd.xlane.f32.xlu0 %v41_v26 }
 0x12e   :  { %v30_v27 = vpop.xlane.xlu0 %29 }
 0x12f   :  { %92 = vlog2.f32 %v30_v27 }
 0x132   :  { %v33_v28 = vpop.xlane.xlu1 %32  ;;  %v58_v29 = vpop.xlane.xlu0 %57 }
 0x133   :  { %94 = vlog2.f32 %v33_v28  ;;  %v68_v33 = vsub.f32 %v58_v29, %v18_v7 }
 0x136   :  { %v61_v30 = vpop.xlane.xlu0 %60 }
 0x137   :  { %v69_v39 = vsub.f32 %v61_v30, %v21_v10 }
 0x139   :  { %v93_v31 = vpop.eup %92 }
 0x13a   :  { %v35_v32 = vmul.f32 0.6931472, %v93_v31  ;;  %v40_v34 = vpop.xlane.xlu0 %39 }
 0x13c   :  { %v70_v35 = vsub.f32 %v68_v33, %v35_v32  ;;  %v62_v36 = vmul.f32 32.0, %v35_v32 }
 0x13d   :  { %v95_v37 = vpop.eup %94 }
 0x13e   :  { %v37_v38 = vmul.f32 0.6931472, %v95_v37  ;;  %v64_v40 = vsub.f32 %v40_v34, %v62_v36  ;;  %v72_v41 = vmul.f32 0.8967742, %v70_v35  ;;  %v43_v45 = vpop.xlane.xlu0 %42 }
 0x140   :  { %v71_v42 = vsub.f32 %v69_v39, %v37_v38  ;;  %v66_v43 = vmul.f32 0.0032258064, %v64_v40  ;;  %v63_v44 = vmul.f32 32.0, %v37_v38 }
 0x142   :  { %v74_v46 = vadd.f32 %v72_v41, %v66_v43  ;;  %v65_v47 = vsub.f32 %v43_v45, %v63_v44  ;;  %v73_v48 = vmul.f32 0.8967742, %v71_v42 }
 0x144   :  { %v76_v49 = vsub.f32 0.0, %v74_v46  ;;  %v67_v50 = vmul.f32 0.0032258064, %v65_v47 }
 0x146   :  { %79 = vst.msk [vmem:[%s140_s2] sm:$0xff] %vm78_vm3, %v76_v49  ;;  %v75_v51 = vadd.f32 %v73_v48, %v67_v50 }
 0x148   :  { %v77_v52 = vsub.f32 0.0, %v75_v51 }
 0x14a   :  { %80 = vst.msk [vmem:[%s140_s2 + $0x8] sm:$0xff] %vm78_vm3, %v77_v52 }

</bundles_post_ra>
